<compile_context>
chip_gen: v7x
topology: tpu7x:2x2x1
jax: 0.10.0
libtpu: 0.0.40
codegen_flags: <defaults>
</compile_context>

<pallas_src>
import functools

import numpy as np
import jax
import jax.numpy as jnp
from jax.experimental import pallas as pl
from jax.experimental.pallas import tpu as pltpu


# ----------------------------------------------------------------------------
# In-kernel math helpers
# ----------------------------------------------------------------------------

def _gelu_tanh(x):
    # tanh-GELU: EUP tanh + a few VALU ops (vs ~20+ VALU for the erf poly).
    c = 0.7978845608028654
    return 0.5 * x * (1.0 + jnp.tanh(c * (x + 0.044715 * x * x * x)))


def _round_up(x, m):
    return (x + m - 1) // m * m


# ----------------------------------------------------------------------------
# Tile-size helpers (chosen sizes are multiples of 8 or full dims so every
# BlockSpec satisfies the (8, 128) tiling constraint)
# ----------------------------------------------------------------------------

def _pick_tile(dim, candidates):
    for c in candidates:
        if c <= dim and dim % c == 0:
            return c
    # Weight dims in this model are either 128-multiples or small (<=1024),
    # so the full-dim fallback stays VMEM-safe.
    return dim


def _choose_m_tile(M):
    # M tile for plain matmuls; if nothing divides, pad M up to a multiple of 8.
    for c in (256, 128, 64, 32, 16, 8):
        if c <= M and M % c == 0:
            return c, M
    Mp = _round_up(M, 8)
    for c in (256, 128, 64, 32, 16, 8):
        if Mp % c == 0:
            return c, Mp
    return 8, Mp


def _pick_group_tile(group_rows):
    # M tile that divides the per-batch row count (for per-batch GRN scale).
    for c in (256, 128, 64, 32, 16, 8):
        if c <= group_rows and group_rows % c == 0:
            return c
    return None


def _pick_seq_tile(L, row_bytes):
    # Sequence tile capped by bytes (~2 MiB per buffer) so v5e's 16 MiB default
    # scoped VMEM is never exceeded even with C4=4096.
    cap = max(8, (2 * 1024 * 1024) // max(1, row_bytes))
    for c in (1024, 512, 256, 128, 64, 32, 16, 8):
        if c <= cap and c <= L and L % c == 0:
            return c
    return L


def _pick_strip(H, W, C):
    # Largest divisor of H (>= 4) whose f32 accumulator strip stays ~<= 2 MiB.
    budget_rows = max(1, (2 * 1024 * 1024) // max(1, W * C * 4))
    if budget_rows >= H or H < 16:
        return H
    for th in range(min(H, budget_rows), 3, -1):
        if H % th == 0:
            return th
    return H


def _vmem_limit(need_bytes):
    return int(min(max(2 * need_bytes, 32 << 20), 96 << 20))


# ----------------------------------------------------------------------------
# Fused, tiled matmul: y = act(x @ W + b [+ residual]), optional per-batch
# per-K scale on x (fuses the GRN apply into pwconv2).  Accumulates in an f32
# VMEM scratch; the last-k step adds the final partial directly (no extra
# store/load round trip) and writes the bf16/f32 output.
# ----------------------------------------------------------------------------

def _matmul_kernel(*refs, activation, has_scale, has_res, nk):
    x_ref, w_ref, b_ref = refs[0], refs[1], refs[2]
    pos = 3
    s_ref = r_ref = None
    if has_scale:
        s_ref = refs[pos]; pos += 1
    if has_res:
        r_ref = refs[pos]; pos += 1
    o_ref = refs[pos]; pos += 1
    acc_ref = refs[pos] if nk > 1 else None

    k = pl.program_id(2)
    xb = x_ref[...]
    if has_scale:
        xb = xb * s_ref[0]                        # (tm, tk) * (1, tk), bf16
    partial = jnp.dot(xb.astype(jnp.bfloat16), w_ref[...],
                      preferred_element_type=jnp.float32)

    def epilogue(tot):
        y = tot + b_ref[...]
        if has_res:
            y = y + r_ref[...].astype(jnp.float32)
        if activation == "relu":
            y = jnp.maximum(y, 0.0)
        elif activation == "gelu":
            y = _gelu_tanh(y)
        o_ref[...] = y.astype(o_ref.dtype)

    if nk == 1:
        epilogue(partial)
    else:
        @pl.when(k == 0)
        def _():
            acc_ref[...] = partial

        @pl.when(jnp.logical_and(k > 0, k < nk - 1))
        def _():
            acc_ref[...] += partial

        @pl.when(k == nk - 1)
        def _():
            epilogue(acc_ref[...] + partial)


@functools.lru_cache(maxsize=None)
def _matmul_call(M, K, N, tm, group_rows, activation, has_scale, has_res,
                 out_dtype):
    tk = _pick_tile(K, (512, 256, 128))
    tn = _pick_tile(N, (512, 256, 128))
    nk = K // tk
    grid = (M // tm, N // tn, nk)

    in_specs = [
        pl.BlockSpec((tm, tk), lambda i, j, k: (i, k)),
        pl.BlockSpec((tk, tn), lambda i, j, k: (k, j)),
        pl.BlockSpec((1, tn), lambda i, j, k: (0, j)),
    ]
    if has_scale:
        gr = group_rows // tm
        in_specs.append(
            pl.BlockSpec((1, 1, tk), lambda i, j, k: (i // gr, 0, k)))
    if has_res:
        in_specs.append(pl.BlockSpec((tm, tn), lambda i, j, k: (i, j)))

    scratch = [pltpu.VMEM((tm, tn), jnp.float32)] if nk > 1 else []
    need = 2 * (tm * tk * 4 + tk * tn * 2 + tm * tn * 4) + tm * tn * 4

    f = pl.pallas_call(
        functools.partial(_matmul_kernel, activation=activation,
                          has_scale=has_scale, has_res=has_res, nk=nk),
        out_shape=jax.ShapeDtypeStruct((M, N), jnp.dtype(out_dtype)),
        grid_spec=pltpu.PrefetchScalarGridSpec(
            num_scalar_prefetch=0,
            grid=grid,
            in_specs=in_specs,
            out_specs=pl.BlockSpec((tm, tn), lambda i, j, k: (i, j)),
            scratch_shapes=scratch,
        ),
        compiler_params=pltpu.CompilerParams(
            dimension_semantics=("parallel", "parallel", "arbitrary"),
            vmem_limit_bytes=_vmem_limit(need)),
    )
    return jax.jit(f)


def matmul_bias(x, w, b, activation="none", scale=None, residual=None,
                group_rows=0, out_dtype=jnp.bfloat16):
    M, K = x.shape
    N = w.shape[1]
    has_scale = scale is not None
    has_res = residual is not None
    if has_scale:
        tm = _pick_group_tile(group_rows)
        assert tm is not None
        Mp = M
    else:
        tm, Mp = _choose_m_tile(M)
        if Mp != M:
            x = jnp.pad(x, ((0, Mp - M), (0, 0)))
            if has_res:
                residual = jnp.pad(residual, ((0, Mp - M), (0, 0)))
    f = _matmul_call(Mp, K, N, tm, group_rows if has_scale else 0,
                     activation, has_scale, has_res,
                     jnp.dtype(out_dtype).name)
    args = [x, w, b.reshape(1, N)]
    if has_scale:
        args.append(scale)
    if has_res:
        args.append(residual)
    y = f(*args)
    return y[:M] if Mp != M else y


# ----------------------------------------------------------------------------
# pwconv1 + tanh-GELU matmul with fused GRN sum-of-squares statistics.
# Grid (j, i, k) so the (B, 1, 4C) stats block is resident across the i tiles
# of one batch group ('arbitrary' i/k axes); h is never re-read from HBM.
# ----------------------------------------------------------------------------

def _pw1_kernel(*refs, nk, gr):
    x_ref, w_ref, b_ref, o_ref, ssq_ref = refs[:5]
    acc_ref = refs[5] if nk > 1 else None
    i = pl.program_id(1)
    k = pl.program_id(2)

    partial = jnp.dot(x_ref[...], w_ref[...],
                      preferred_element_type=jnp.float32)

    @pl.when(jnp.logical_and(k == 0, i % gr == 0))
    def _():
        ssq_ref[...] = jnp.zeros_like(ssq_ref)

    if nk > 1:
        @pl.when(k == 0)
        def _():
            acc_ref[...] = partial

        @pl.when(jnp.logical_and(k > 0, k < nk - 1))
        def _():
            acc_ref[...] += partial

    @pl.when(k == nk - 1)
    def _():
        tot = partial if nk == 1 else acc_ref[...] + partial
        y = _gelu_tanh(tot + b_ref[...])
        o_ref[...] = y.astype(o_ref.dtype)
        ssq_ref[...] += jnp.sum(y * y, axis=0)[None, None, :]


@functools.lru_cache(maxsize=None)
def _pw1_grn_call(M, K, N, L):
    B = M // L
    tm = _pick_group_tile(L)
    tk = _pick_tile(K, (512, 256, 128))
    tn = _pick_tile(N, (512, 256, 128))
    gr = L // tm
    nk = K // tk
    grid = (N // tn, M // tm, nk)

    scratch = [pltpu.VMEM((tm, tn), jnp.float32)] if nk > 1 else []
    need = 2 * (tm * tk * 2 + tk * tn * 2 + tm * tn * 2) + tm * tn * 4

    f = pl.pallas_call(
        functools.partial(_pw1_kernel, nk=nk, gr=gr),
        out_shape=(jax.ShapeDtypeStruct((M, N), jnp.bfloat16),
                   jax.ShapeDtypeStruct((B, 1, N), jnp.float32)),
        grid_spec=pltpu.PrefetchScalarGridSpec(
            num_scalar_prefetch=0,
            grid=grid,
            in_specs=[
                pl.BlockSpec((tm, tk), lambda j, i, k: (i, k)),
                pl.BlockSpec((tk, tn), lambda j, i, k: (k, j)),
                pl.BlockSpec((1, tn), lambda j, i, k: (0, j)),
            ],
            out_specs=[
                pl.BlockSpec((tm, tn), lambda j, i, k: (i, j)),
                pl.BlockSpec((1, 1, tn), lambda j, i, k: (i // gr, 0, j)),
            ],
            scratch_shapes=scratch,
        ),
        compiler_params=pltpu.CompilerParams(
            dimension_semantics=("parallel", "arbitrary", "arbitrary"),
            vmem_limit_bytes=_vmem_limit(need)),
    )
    return jax.jit(f)


def pwconv1_gelu_grn(x2d, w, b, group_rows):
    M, K = x2d.shape
    N = w.shape[1]
    return _pw1_grn_call(M, K, N, group_rows)(x2d, w, b.reshape(1, N))


# ----------------------------------------------------------------------------
# Depthwise 7x7 conv + LayerNorm fused (grid over batch x H-strips).
# Halo strip built in VMEM from the unpadded image block; no jnp.pad.
# ----------------------------------------------------------------------------

@functools.lru_cache(maxsize=None)
def _dwconv_ln_call(B, H, W, C, th):
    n_strips = H // th

    def kernel(x_ref, w_ref, b_ref, g_ref, bt_ref, o_ref, scr_ref):
        i = pl.program_id(1)
        row0 = i * th

        # Build a zero-padded (th+6, W+6, C) f32 halo strip in VMEM from the
        # unpadded bf16 image block.
        scr_ref[...] = jnp.zeros(scr_ref.shape, scr_ref.dtype)
        if n_strips == 1:
            scr_ref[pl.ds(3, H), pl.ds(3, W), :] = x_ref[0].astype(jnp.float32)
        else:
            @pl.when(i == 0)
            def _():
                scr_ref[pl.ds(3, th + 3), pl.ds(3, W), :] = (
                    x_ref[0, pl.ds(0, th + 3), :, :].astype(jnp.float32))

            @pl.when(jnp.logical_and(i > 0, i < n_strips - 1))
            def _():
                scr_ref[pl.ds(0, th + 6), pl.ds(3, W), :] = (
                    x_ref[0, pl.ds(row0 - 3, th + 6), :, :].astype(jnp.float32))

            @pl.when(i == n_strips - 1)
            def _():
                scr_ref[pl.ds(0, th + 3), pl.ds(3, W), :] = (
                    x_ref[0, pl.ds(H - th - 3, th + 3), :, :].astype(jnp.float32))

        # 49-tap depthwise conv; taps loaded straight from the scratch ref at
        # static offsets, per-tap weight row read straight from the weight ref.
        acc = jnp.zeros((th, W, C), jnp.float32)
        for t in range(49):
            dy, dx = divmod(t, 7)
            acc = acc + scr_ref[pl.ds(dy, th), pl.ds(dx, W), :] * w_ref[t, :]
        y = acc + b_ref[...]

        mu = jnp.mean(y, axis=-1, keepdims=True)
        var = jnp.mean(jnp.square(y - mu), axis=-1, keepdims=True)
        yn = (y - mu) * jax.lax.rsqrt(var + 1e-6) * g_ref[...] + bt_ref[...]
        o_ref[0] = yn.astype(o_ref.dtype)

    need = (2 * H * W * C * 2                    # unpadded image, bf16, 2 bufs
            + (th + 6) * (W + 6) * C * 4         # halo scratch, f32
            + 2 * th * W * C * 2                 # output strips, bf16, 2 bufs
            + 4 * 49 * C * 4)

    f = pl.pallas_call(
        kernel,
        out_shape=jax.ShapeDtypeStruct((B, H, W, C), jnp.bfloat16),
        grid_spec=pltpu.PrefetchScalarGridSpec(
            num_scalar_prefetch=0,
            grid=(B, n_strips),
            in_specs=[
                pl.BlockSpec((1, H, W, C), lambda b, i: (b, 0, 0, 0)),
                pl.BlockSpec((49, C), lambda b, i: (0, 0)),
                pl.BlockSpec((1, C), lambda b, i: (0, 0)),
                pl.BlockSpec((1, C), lambda b, i: (0, 0)),
                pl.BlockSpec((1, C), lambda b, i: (0, 0)),
            ],
            out_specs=pl.BlockSpec((1, th, W, C), lambda b, i: (b, i, 0, 0)),
            scratch_shapes=[pltpu.VMEM((th + 6, W + 6, C), jnp.float32)],
        ),
        compiler_params=pltpu.CompilerParams(
            dimension_semantics=("parallel", "parallel"),
            vmem_limit_bytes=_vmem_limit(need)),
    )
    return jax.jit(f)


def dwconv_ln(x, w49, b, g, beta):
    B, H, W, C = x.shape
    th = _pick_strip(H, W, C)
    return _dwconv_ln_call(B, H, W, C, th)(
        x, w49, b.reshape(1, C), g.reshape(1, C), beta.reshape(1, C))


# ----------------------------------------------------------------------------
# GRN: finalize kernel (from fused/standalone sum-of-squares) + tiny-spatial
# fallback kernels.
#   s[b, c] = 1 + gamma[c] * Gx[b, c] / (mean_c Gx[b, :] + 1e-6),  Gx = sqrt(ssq)
# ----------------------------------------------------------------------------

@functools.lru_cache(maxsize=None)
def _grn_finalize_call(B, C4):
    def kernel(ssq_ref, g_ref, o_ref):
        gx = jnp.sqrt(ssq_ref[...])
        mean = jnp.mean(gx, axis=-1, keepdims=True)
        nx = gx * pl.reciprocal(mean + 1e-6, approx=True)
        o_ref[...] = (1.0 + g_ref[...] * nx).astype(o_ref.dtype)

    f = pl.pallas_call(
        kernel,
        out_shape=jax.ShapeDtypeStruct((B, 1, C4), jnp.bfloat16),
        grid_spec=pltpu.PrefetchScalarGridSpec(
            num_scalar_prefetch=0, grid=(B,),
            in_specs=[pl.BlockSpec((1, 1, C4), lambda b: (b, 0, 0)),
                      pl.BlockSpec((1, 1, C4), lambda b: (0, 0, 0))],
            out_specs=pl.BlockSpec((1, 1, C4), lambda b: (b, 0, 0))),
        compiler_params=pltpu.CompilerParams(
            dimension_semantics=("parallel",)),
    )
    return jax.jit(f)


def grn_finalize(ssq, gamma_11c):
    B, _, C4 = ssq.shape
    return _grn_finalize_call(B, C4)(ssq, gamma_11c)


@functools.lru_cache(maxsize=None)
def _grn_sumsq_call(B, L, C4):
    tl = _pick_seq_tile(L, C4 * 2)

    def kernel(x_ref, o_ref):
        i = pl.program_id(1)

        @pl.when(i == 0)
        def _():
            o_ref[...] = jnp.zeros_like(o_ref)

        xb = x_ref[...].astype(jnp.float32)
        o_ref[...] += jnp.sum(xb * xb, axis=1, keepdims=True)

    f = pl.pallas_call(
        kernel,
        out_shape=jax.ShapeDtypeStruct((B, 1, C4), jnp.float32),
        grid_spec=pltpu.PrefetchScalarGridSpec(
            num_scalar_prefetch=0,
            grid=(B, L // tl),
            in_specs=[pl.BlockSpec((1, tl, C4), lambda b, i: (b, i, 0))],
            out_specs=pl.BlockSpec((1, 1, C4), lambda b, i: (b, 0, 0))),
        compiler_params=pltpu.CompilerParams(
            dimension_semantics=("parallel", "arbitrary")),
    )
    return jax.jit(f)


def grn_sumsq(h3d):
    B, L, C4 = h3d.shape
    return _grn_sumsq_call(B, L, C4)(h3d)


@functools.lru_cache(maxsize=None)
def _grn_apply_call(B, L, C4):
    tl = _pick_seq_tile(L, C4 * 2)

    def kernel(x_ref, s_ref, o_ref):
        o_ref[...] = (x_ref[...] * s_ref[...]).astype(o_ref.dtype)

    f = pl.pallas_call(
        kernel,
        out_shape=jax.ShapeDtypeStruct((B, L, C4), jnp.bfloat16),
        grid_spec=pltpu.PrefetchScalarGridSpec(
            num_scalar_prefetch=0,
            grid=(B, L // tl),
            in_specs=[pl.BlockSpec((1, tl, C4), lambda b, i: (b, i, 0)),
                      pl.BlockSpec((1, 1, C4), lambda b, i: (b, 0, 0))],
            out_specs=pl.BlockSpec((1, tl, C4), lambda b, i: (b, i, 0))),
        compiler_params=pltpu.CompilerParams(
            dimension_semantics=("parallel", "parallel")),
    )
    return jax.jit(f)


def grn_apply(h3d, s):
    B, L, C4 = h3d.shape
    return _grn_apply_call(B, L, C4)(h3d, s)


# ----------------------------------------------------------------------------
# Standalone LayerNorm (stem / downsample), tiled over rows
# ----------------------------------------------------------------------------

@functools.lru_cache(maxsize=None)
def _layernorm_call(M, C):
    tm = _pick_tile(M, (512, 256, 128, 64, 32, 16, 8))

    def kernel(x_ref, w_ref, b_ref, o_ref):
        x = x_ref[...].astype(jnp.float32)
        mu = jnp.mean(x, axis=-1, keepdims=True)
        var = jnp.mean(jnp.square(x - mu), axis=-1, keepdims=True)
        y = (x - mu) * jax.lax.rsqrt(var + 1e-6) * w_ref[...] + b_ref[...]
        o_ref[...] = y.astype(o_ref.dtype)

    f = pl.pallas_call(
        kernel,
        out_shape=jax.ShapeDtypeStruct((M, C), jnp.bfloat16),
        grid_spec=pltpu.PrefetchScalarGridSpec(
            num_scalar_prefetch=0,
            grid=(M // tm,),
            in_specs=[pl.BlockSpec((tm, C), lambda i: (i, 0)),
                      pl.BlockSpec((1, C), lambda i: (0, 0)),
                      pl.BlockSpec((1, C), lambda i: (0, 0))],
            out_specs=pl.BlockSpec((tm, C), lambda i: (i, 0))),
        compiler_params=pltpu.CompilerParams(
            dimension_semantics=("parallel",)),
    )
    return jax.jit(f)


def layer_norm(x2d, w, b):
    M, C = x2d.shape
    Mp = M if any(M % c == 0 for c in (512, 256, 128, 64, 32, 16, 8)) \
        else _round_up(M, 8)
    if Mp != M:
        x2d = jnp.pad(x2d, ((0, Mp - M), (0, 0)))
    y = _layernorm_call(Mp, C)(x2d, w.reshape(1, C), b.reshape(1, C))
    return y[:M] if Mp != M else y


# ----------------------------------------------------------------------------
# Global average pool (tiled accumulation over spatial)
# ----------------------------------------------------------------------------

@functools.lru_cache(maxsize=None)
def _gap_call(B, L, C):
    tl = _pick_seq_tile(L, C * 2)
    inv = float(1.0 / L)

    def kernel(x_ref, o_ref):
        i = pl.program_id(1)

        @pl.when(i == 0)
        def _():
            o_ref[...] = jnp.zeros_like(o_ref)

        o_ref[...] += jnp.sum(x_ref[...].astype(jnp.float32), axis=1,
                              keepdims=True)

        @pl.when(i == pl.num_programs(1) - 1)
        def _():
            o_ref[...] = o_ref[...] * inv

    f = pl.pallas_call(
        kernel,
        out_shape=jax.ShapeDtypeStruct((B, 1, C), jnp.float32),
        grid_spec=pltpu.PrefetchScalarGridSpec(
            num_scalar_prefetch=0,
            grid=(B, L // tl),
            in_specs=[pl.BlockSpec((1, tl, C), lambda b, i: (b, i, 0))],
            out_specs=pl.BlockSpec((1, 1, C), lambda b, i: (b, 0, 0))),
        compiler_params=pltpu.CompilerParams(
            dimension_semantics=("parallel", "arbitrary")),
    )
    return jax.jit(f)


def global_avg_pool(x):
    B, H, W, C = x.shape
    return _gap_call(B, H * W, C)(x.reshape(B, H * W, C)).reshape(B, C)


# ----------------------------------------------------------------------------
# 4-way max (2x2 maxpool on the small DSM branch), tiled over rows
# ----------------------------------------------------------------------------

@functools.lru_cache(maxsize=None)
def _max4_call(M, C):
    tm = _pick_tile(M, (512, 256, 128, 64, 32, 16, 8))

    def kernel(a_ref, b_ref, c_ref, d_ref, o_ref):
        o_ref[...] = jnp.maximum(jnp.maximum(a_ref[...], b_ref[...]),
                                 jnp.maximum(c_ref[...], d_ref[...]))

    spec = pl.BlockSpec((tm, C), lambda i: (i, 0))
    f = pl.pallas_call(
        kernel,
        out_shape=jax.ShapeDtypeStruct((M, C), jnp.bfloat16),
        grid_spec=pltpu.PrefetchScalarGridSpec(
            num_scalar_prefetch=0, grid=(M // tm,),
            in_specs=[spec, spec, spec, spec], out_specs=spec),
        compiler_params=pltpu.CompilerParams(
            dimension_semantics=("parallel",)),
    )
    return jax.jit(f)


def maxpool2x2(x):
    # Strided gather is XLA glue, confined to the tiny DSM branch.
    B, H, W, C = x.shape
    Ho, Wo = H // 2, W // 2
    a = x[:, 0::2, 0::2, :].reshape(-1, C)
    b = x[:, 0::2, 1::2, :].reshape(-1, C)
    c = x[:, 1::2, 0::2, :].reshape(-1, C)
    d = x[:, 1::2, 1::2, :].reshape(-1, C)
    return _max4_call(B * Ho * Wo, C)(a, b, c, d).reshape(B, Ho, Wo, C)


# ----------------------------------------------------------------------------
# Conv wrappers (glue: im2col / patchify; compute: fused Pallas matmul)
# ----------------------------------------------------------------------------

def conv3x3_same(x, w_mat, b, activation):
    # im2col materialization only used on the small DSM branch.
    B, H, W, Cin = x.shape
    xp = jnp.pad(x, ((0, 0), (1, 1), (1, 1), (0, 0)))
    cols = [xp[:, dy:dy + H, dx:dx + W, :] for dy in range(3) for dx in range(3)]
    patches = jnp.concatenate(cols, axis=-1).reshape(B * H * W, 9 * Cin)
    y = matmul_bias(patches, w_mat, b, activation)
    return y.reshape(B, H, W, w_mat.shape[1])


def patchify_conv(x, w_mat, b, p):
    B, H, W, Cin = x.shape
    Ho, Wo = H // p, W // p
    xr = (x.reshape(B, Ho, p, Wo, p, Cin)
           .transpose(0, 1, 3, 2, 4, 5)
           .reshape(B * Ho * Wo, p * p * Cin))
    y = matmul_bias(xr, w_mat, b, "none")
    return y.reshape(B, Ho, Wo, w_mat.shape[1])


# ----------------------------------------------------------------------------
# Model definition (convnextv2_base backbone + DSM branch + heads)
# ----------------------------------------------------------------------------

DEPTHS = (3, 3, 27, 3)            # convnextv2_base
DIMS = (128, 256, 512, 1024)
RGB_FEATURE_DIM = 1024
DSM_CHANNELS = (1, 16, 32, 64, 128)

_rng = np.random.default_rng(0)


def _np_randn(shape):
    return _rng.standard_normal(shape, dtype=np.float32)


def _conv_matmul_params(cout, cin, kh, kw):
    # torch Conv2d weight (cout, cin, kh, kw) -> im2col/patchify matmul layout.
    w = _np_randn((cout, cin, kh, kw)) * np.float32(1.0 / np.sqrt(cin * kh * kw))
    w = np.transpose(w, (2, 3, 1, 0)).reshape(kh * kw * cin, cout)
    b = _np_randn((cout,)) * np.float32(0.01)
    return jnp.asarray(w, dtype=jnp.bfloat16), jnp.asarray(b)


def _dwconv_params(c):
    # torch depthwise Conv2d weight (c, 1, 7, 7) -> flattened (49, c).
    w = _np_randn((c, 1, 7, 7)) * np.float32(1.0 / 7.0)
    w = np.ascontiguousarray(np.transpose(w[:, 0], (1, 2, 0))).reshape(49, c)
    b = _np_randn((c,)) * np.float32(0.01)
    return jnp.asarray(w), jnp.asarray(b)


def _linear_params_np(fin, fout):
    # torch Linear weight (fout, fin) -> (fin, fout).
    w = _np_randn((fout, fin)) * np.float32(1.0 / np.sqrt(fin))
    b = _np_randn((fout,)) * np.float32(0.01)
    return np.ascontiguousarray(w.T), b


def _linear_params(fin, fout):
    w, b = _linear_params_np(fin, fout)
    return jnp.asarray(w, dtype=jnp.bfloat16), jnp.asarray(b)


def _ln_params(c):
    return jnp.ones((c,), jnp.float32), jnp.zeros((c,), jnp.float32)


def init_params():
    P = {}
    # Stem: Conv2d(3, 128, 4, stride=4) + LayerNorm2d(128)
    P["stem_w"], P["stem_b"] = _conv_matmul_params(DIMS[0], 3, 4, 4)
    P["stem_ln_w"], P["stem_ln_b"] = _ln_params(DIMS[0])

    stages = []
    prev = DIMS[0]
    for si, (depth, dim) in enumerate(zip(DEPTHS, DIMS)):
        st = {}
        if si > 0:
            # Downsample: LayerNorm2d(prev) + Conv2d(prev, dim, 2, stride=2)
            st["ds_ln_w"], st["ds_ln_b"] = _ln_params(prev)
            st["ds_w"], st["ds_b"] = _conv_matmul_params(dim, prev, 2, 2)
        blocks = []
        for _ in range(depth):
            blk = {}
            blk["dw_w"], blk["dw_b"] = _dwconv_params(dim)
            blk["ln_w"], blk["ln_b"] = _ln_params(dim)
            w1, b1 = _linear_params_np(dim, 4 * dim)
            w2, b2 = _linear_params_np(4 * dim, dim)
            grn_g = _np_randn((4 * dim,)) * np.float32(0.1)
            grn_b = _np_randn((4 * dim,)) * np.float32(0.1)
            blk["pw1_w"] = jnp.asarray(w1, dtype=jnp.bfloat16)
            blk["pw1_b"] = jnp.asarray(b1)
            blk["grn_g"] = jnp.asarray(grn_g.reshape(1, 1, 4 * dim))
            blk["pw2_w"] = jnp.asarray(w2, dtype=jnp.bfloat16)
            # GRN beta folded into the pwconv2 bias: (x*s + beta) @ W2 + b2
            blk["pw2_b"] = jnp.asarray(b2 + grn_b @ w2)
            blocks.append(blk)
        st["blocks"] = blocks
        stages.append(st)
        prev = dim
    P["stages"] = stages

    # DSM branch: 4x (Conv2d 3x3 pad1 + ReLU), 3x MaxPool2d(2), AdaptiveAvgPool
    P["dsm_convs"] = [_conv_matmul_params(cout, cin, 3, 3)
                      for cin, cout in zip(DSM_CHANNELS[:-1], DSM_CHANNELS[1:])]
    P["dsm_fc_w"], P["dsm_fc_b"] = _linear_params(DSM_CHANNELS[-1], RGB_FEATURE_DIM)

    # Regression head
    P["fc1_w"], P["fc1_b"] = _linear_params(RGB_FEATURE_DIM * 2, 512)
    P["fc2_w"], P["fc2_b"] = _linear_params(512, 256)
    P["fc3_w"], P["fc3_b"] = _linear_params(256, 1)
    return P


def convnextv2_block(x, blk):
    B, H, W, C = x.shape
    L = H * W
    C4 = 4 * C
    shortcut = x.reshape(B * L, C)                               # bf16
    # (1) depthwise 7x7 conv + LayerNorm fused, halo built in VMEM (no pad)
    xn = dwconv_ln(x, blk["dw_w"], blk["dw_b"], blk["ln_w"], blk["ln_b"])
    xn2 = xn.reshape(B * L, C)
    if _pick_group_tile(L) is not None:
        # (2) pwconv1 + GELU with fused GRN sum-of-squares statistics
        h, ssq = pwconv1_gelu_grn(xn2, blk["pw1_w"], blk["pw1_b"], L)
        # (3) tiny GRN finalize -> per-(batch, channel) scale (bf16)
        s = grn_finalize(ssq, blk["grn_g"])                      # (B, 1, 4C)
        # (4) pwconv2 with the GRN scale fused into the K stream + residual
        out = matmul_bias(h, blk["pw2_w"], blk["pw2_b"], "none",
                          scale=s, residual=shortcut, group_rows=L)
    else:
        # Tiny-spatial fallback (no M tile divides L): separate GRN passes.
        h = matmul_bias(xn2, blk["pw1_w"], blk["pw1_b"], "gelu")
        ssq = grn_sumsq(h.reshape(B, L, C4))
        s = grn_finalize(ssq, blk["grn_g"])
        hs = grn_apply(h.reshape(B, L, C4), s).reshape(B * L, C4)
        out = matmul_bias(hs, blk["pw2_w"], blk["pw2_b"], "none",
                          residual=shortcut)
    return out.reshape(B, H, W, C)


def forward(params, rgb_nchw, dsm_nchw):
    rgb = jnp.transpose(rgb_nchw, (0, 2, 3, 1)).astype(jnp.bfloat16)  # NHWC
    dsm = jnp.transpose(dsm_nchw, (0, 2, 3, 1)).astype(jnp.bfloat16)

    # --- rgb_model.forward_features (ConvNeXtV2-base) ---
    x = patchify_conv(rgb, params["stem_w"], params["stem_b"], 4)
    B, H, W, C = x.shape
    x = layer_norm(x.reshape(-1, C), params["stem_ln_w"],
                   params["stem_ln_b"]).reshape(B, H, W, C)
    for si, stage in enumerate(params["stages"]):
        if si > 0:
            B, H, W, C = x.shape
            x = layer_norm(x.reshape(-1, C), stage["ds_ln_w"],
                           stage["ds_ln_b"]).reshape(B, H, W, C)
            x = patchify_conv(x, stage["ds_w"], stage["ds_b"], 2)
        for blk in stage["blocks"]:
            x = convnextv2_block(x, blk)
    # adaptive_avg_pool2d((1,1)) + flatten
    rgb_features = global_avg_pool(x)                                # (B, 1024)

    # --- dsm_conv ---
    y = dsm
    for i, (wc, bc) in enumerate(params["dsm_convs"]):
        y = conv3x3_same(y, wc, bc, "relu")
        if i < 3:
            y = maxpool2x2(y)
    dsm_features = global_avg_pool(y)                                # (B, 128)
    dsm_features = matmul_bias(dsm_features, params["dsm_fc_w"],
                               params["dsm_fc_b"], "none",
                               out_dtype=jnp.float32)                # (B, 1024)

    combined = jnp.concatenate([rgb_features, dsm_features], axis=1)  # (B, 2048)
    h = matmul_bias(combined, params["fc1_w"], params["fc1_b"], "relu",
                    out_dtype=jnp.float32)
    h = matmul_bias(h, params["fc2_w"], params["fc2_b"], "relu",
                    out_dtype=jnp.float32)
    return matmul_bias(h, params["fc3_w"], params["fc3_b"], "none",
                       out_dtype=jnp.float32)                         # (B, 1)


if __name__ == "__main__":
    key = jax.random.PRNGKey(0)
    k1, k2 = jax.random.split(key)
    # PyTorch-convention NCHW inputs (rgb spatial divisible by 32, dsm by 8);
    # small shapes for a quick run.
    rgb = jax.random.normal(k1, (2, 3, 64, 64), jnp.float32)
    dsm = jax.random.normal(k2, (2, 1, 16, 32), jnp.float32)

    params = init_params()
    out = forward(params, rgb, dsm)
    out = jax.block_until_ready(out)
    assert out.shape == (2, 1) and out.dtype == jnp.float32
    print("KERNEL_OK")
</pallas_src>

<mosaic_0001>
module attributes {stable_mosaic.version = 11 : i64} {
  func.func @_matmul_kernel(%arg0: i32, %arg1: i32, %arg2: i32, %arg3: memref<256x48xbf16, #tpu.memory_space<vmem>>, %arg4: memref<48x128xbf16, #tpu.memory_space<vmem>>, %arg5: memref<1x128xf32, #tpu.memory_space<vmem>>, %arg6: memref<256x128xbf16, #tpu.memory_space<vmem>>) attributes {dimension_semantics = [#tpu.dimension_semantics<parallel>, #tpu.dimension_semantics<parallel>, #tpu.dimension_semantics<arbitrary>], iteration_bounds = array<i64: 2, 1, 1>, scalar_prefetch = 0 : i64, scratch_operands = 0 : i64, tpu.core_type = #tpu.core_type<tc>, window_params = [{transform_indices = @transform_0, window_bounds = array<i64: 256, 48>}, {transform_indices = @transform_1, window_bounds = array<i64: 48, 128>}, {transform_indices = @transform_2, window_bounds = array<i64: 1, 128>}, {transform_indices = @transform_3, window_bounds = array<i64: 256, 128>}]} {
    %c0 = arith.constant 0 : index
    %c0_0 = arith.constant 0 : index
    %0 = vector.load %arg3[%c0, %c0_0] : memref<256x48xbf16, #tpu.memory_space<vmem>>, vector<256x48xbf16>
    %c0_1 = arith.constant 0 : index
    %c0_2 = arith.constant 0 : index
    %1 = vector.load %arg4[%c0_1, %c0_2] : memref<48x128xbf16, #tpu.memory_space<vmem>>, vector<48x128xbf16>
    %cst = arith.constant dense<0.000000e+00> : vector<256x128xf32>
    %2 = tpu.matmul %0, %1, %cst {dimension_numbers = #tpu.dot_dimension_numbers<[1], [0], [0], [1], [0, 0, 1, 1], [], []>} : vector<256x48xbf16>, vector<48x128xbf16>, vector<256x128xf32> -> vector<256x128xf32>
    %c0_3 = arith.constant 0 : index
    %c0_4 = arith.constant 0 : index
    %3 = vector.load %arg5[%c0_3, %c0_4] : memref<1x128xf32, #tpu.memory_space<vmem>>, vector<1x128xf32>
    %4 = vector.broadcast %3 : vector<1x128xf32> to vector<256x128xf32>
    %5 = arith.addf %2, %4 : vector<256x128xf32>
    %6 = arith.truncf %5 : vector<256x128xf32> to vector<256x128xbf16>
    %c0_5 = arith.constant 0 : index
    %c0_6 = arith.constant 0 : index
    %7 = vector.load %arg6[%c0_5, %c0_6] : memref<256x128xbf16, #tpu.memory_space<vmem>>, vector<256x128xbf16>
    tpu.vector_store %arg6[%c0_5, %c0_6], %6 {strides = array<i32>} : memref<256x128xbf16, #tpu.memory_space<vmem>>, vector<256x128xbf16>,
    return
  }
  func.func @transform_0(%arg0: i32, %arg1: i32, %arg2: i32) -> (i32, i32) {
    %c0_i32 = arith.constant 0 : i32
    return %arg0, %arg2 : i32, i32
  }
  func.func @transform_1(%arg0: i32, %arg1: i32, %arg2: i32) -> (i32, i32) {
    %c0_i32 = arith.constant 0 : i32
    return %arg2, %arg1 : i32, i32
  }
  func.func @transform_2(%arg0: i32, %arg1: i32, %arg2: i32) -> (i32, i32) {
    %c0_i32 = arith.constant 0 : i32
    %c0_i32_0 = arith.constant 0 : i32
    return %c0_i32, %arg1 : i32, i32
  }
  func.func @transform_3(%arg0: i32, %arg1: i32, %arg2: i32) -> (i32, i32) {
    %c0_i32 = arith.constant 0 : i32
    return %arg0, %arg1 : i32, i32
  }
}

</mosaic_0001>

<bundles_post_ra>
// kernel: tpu_custom_call.1
= control target key start
LH: loop header
LB: loop body
LE: loop exit
PB: predicated region body
PF: predicated region fallthrough
CT: control target
= control target key end

     0   :  { %8 = vsyncpa [#allocation3], 0  ;;  %s1558_s0 = inlined_call_operand.vmem [shape: bf16[512,48], index: 0, kind: input, shape index: {}]   ;;  %s1559_s1 = inlined_call_operand.vmem [shape: bf16[48,128], index: 1, kind: input, shape index: {}]   ;;  %s1560_s2 = inlined_call_operand.vmem [shape: f32[1,128], index: 2, kind: input, shape index: {}]   ;;  %s1561_s3 = inlined_call_operand.hbm [shape: bf16[512,128], index: 3, kind: output, shape index: {}]  }
   0x1   :  { %10 = vsyncpa [#allocation3 + $0x1], 0  ;;  %s1341_s12 = smov 0   ;;  %s1343_s13 = smov 0  }
   0x2   :  { %s1345_s14 = smov 0   ;;  %s1347_s15 = smov 0  }
   0x3   :  { %s1349_s16 = smov 0   ;;  %s1351_s17 = smov 0  }
   0x4 LB: > { %s888_s18 = sadd.s32 4294967295, %s1316_s17   ;;  %s889_s19 = sadd.s32 4294967294, %s1316_s17   ;;  %s1316_s17 = sphi %s1351_s17, %s16_s17   ;;  %s1312_s16 = sphi %s1349_s16, %s1568_s16   ;;  %s1308_s15 = sphi %s1347_s15, %s1567_s15   ;;  %s1304_s14 = sphi %s1345_s14, %s1566_s14   ;;  %s1300_s13 = sphi %s1343_s13, %s1565_s13   ;;  %s1296_s12 = sphi %s1341_s12, %s1564_s12  }
   0x5   : > { %s35_s20 = sadd.s32 1, %s1312_s16  ;;  %s126_s21 = sadd.s32 1, %s1304_s14 }
   0x6   : > { %p37_p0 = scmp.ge.s32.totalorder %s35_s20, 2  ;;  %p136_p1 = scmp.ne.s32.totalorder %s1304_s14, %s1300_s13 }
   0x7   : > { %p137_p2 = scmp.eq.s32.totalorder %s888_s18, 1  ;;  %p142_p3 = scmp.ne.s32.totalorder %s1300_s13, %s1296_s12 }
   0x8   : > { %s1570_s20 = smov (%p37_p0, %s35_s20), 0  ;;  %p143_p5 = scmp.eq.s32.totalorder %s889_s19, 1 }
   0x9   : > { %p1381_p4 = por %p137_p2, %p136_p1  ;;  %s121_s23 = ssub.s32 %s1312_s16, %s1570_s20 }
   0xa   : > { %p894_p6 = scmp.ge.s32.totalorder %s1316_s17, 1  ;;  %p124_p7 = scmp.eq.s32.totalorder %s121_s23, 0 }
   0xb   : > { %p1388_p8 = por %p143_p5, %p142_p3  ;;  %p191_p9 = scmp.lt.s32.totalorder %s1316_s17, 3 }
   0xc   : > { %s1394_s25 = scalar_select %p124_p7, %s1304_s14, %s126_s21  }
   0xd   : > { %p192_p10 = pnand %p894_p6, %p191_p9 }
   0xe   : > { %v1219_v0 = vld [vmem:[%s1559_s1] sm:$0xff] (!%p192_p10)   ;;  %s896_s28 = sshll.u32 (!%p192_p10), %s1308_s15, 5  ;;  %v1220_v1 = vld [vmem:[%s1559_s1 + $0x8] sm:$0xff] (!%p192_p10)   ;;  %v1221_v2 = vld [vmem:[%s1559_s1 + $0x10] sm:$0xff] (!%p192_p10)   ;;  %vm395_vm0 = vcmask (!%p192_p10), 392192   ;;  %s226_s10 = sand.u32 (!%p192_p10), 1, %s1300_s13  }
   0xf   : > { %195 = sbr.rel (%p192_p10) target bundleno = 286 (0x11e), region = 32  ;;  %p230_p11 = scmp.lt.s32.totalorder (!%p192_p10), %s896_s28, 63  ;;  %1118 = vmatprep.subr.bf16.mxu0 (!%p192_p10), %v1219_v0  ;;  %1156 = vmatprep.subr.bf16.mxu1 (!%p192_p10), %v1219_v0  ;;  %v1447_v20 = vld [vmem:[%s1560_s2] ss:$0 sm:$0xff] (!%p192_p10) }
  0x10   : > { %1119 = vmatpush3.bf16.msra.mxu0 (!%p192_p10), %v1219_v0  ;;  %1159 = vmatpush3.bf16.msra.mxu1 (!%p192_p10), %v1219_v0  ;;  %s895_s19 = sshll.u32 (!%p192_p10), %s226_s10, 7  ;;  %s1003_s23 = sshll.u32 (!%p192_p10), %s1308_s15, 11 }
  0x11   : > { %1120 = vmatprep.subr.bf16.mxu0 (!%p192_p10), %v1220_v1  ;;  %1157 = vmatprep.subr.bf16.mxu1 (!%p192_p10), %v1220_v1  ;;  %s1459_s21 = scalar_lea.vmem (!%p192_p10), [#allocation2], %s895_s19  ;;  %s1512_s29 = scalar_lea.sflag (!%p192_p10), [#allocation3], %s226_s10 }
  0x12   : > { %s780_s26 = sshll.u32 (!%p192_p10), %s1459_s21, 4  ;;  %s1318_s4 = smov (!%p192_p10), [#allocation2]   ;;  %s1504_s26 = int_to_ptr.vmem [resolvable:$true] %s780_s26 }
  0x13   : > { %s1238_s30 = scalar_lea.vmem (!%p192_p10), %s1504_s26, 2048  ;;  %s1242_s5 = sshll.u32 (!%p192_p10), %s1318_s4, 4  ;;  %s1243_s5 = int_to_ptr.vmem [resolvable:$false] %s1242_s5 }
  0x14   : > { %1121 = vmatpush3.bf16.msra.mxu0 (!%p192_p10), %v1220_v1  ;;  %1160 = vmatpush3.bf16.msra.mxu1 (!%p192_p10), %v1220_v1  ;;  %p1239_p12 = scmp.ne.s32.totalorder (!%p192_p10), %s1504_s26, %s1238_s30  ;;  %p1245_p1 = scmp.lt.s32.totalorder (!%p192_p10), %s1504_s26, %s1243_s5 }
  0x15   : > { %1122 = vmatprep.subr.bf16.mxu0 (!%p192_p10), %v1221_v2  ;;  %1158 = vmatprep.subr.bf16.mxu1 (!%p192_p10), %v1221_v2 }
  0x16   : > { %s1572_s28 = smov (!%p230_p11, %s896_s28), 63  ;;  %p1240_p13 = pnand %p1239_p12, %p1381_p4 }
  0x17   : > { %s897_s6 = sshll.u32 %s1572_s28, 2  ;;  %s1502_s28 = scalar_lea.hbm %s1561_s3, %s1003_s23 }
  0x18   : > { %s1409_s9 = scalar_lea.vmem %s1558_s0, %s897_s6  ;;  %1123 = vmatpush3.bf16.msra.mxu0 %v1221_v2  ;;  %1161 = vmatpush3.bf16.msra.mxu1 %v1221_v2  ;;  %p1241_p0 = pneg %p1240_p13 }
  0x19   : > { %v1222_v3 = vld [vmem:[%s1409_s9] sm:$0xff]   ;;  %v1224_v5 = vld [vmem:[%s1409_s9 + $0x8] sm:$0xff]   ;;  %v1226_v7 = vld [vmem:[%s1409_s9 + $0x10] sm:$0xff]   ;;  %s1244_s6 = scalar_lea.vmem %s1243_s5, 4096 }
  0x1a   : > { %v1223_v4 = vld [vmem:[%s1409_s9 + $0x40] sm:$0xff]   ;;  %1124 = vmatprep.mubr.msk.bf16.mxu0 %vm395_vm0, %v1222_v3  ;;  %v1225_v6 = vld [vmem:[%s1409_s9 + $0x48] sm:$0xff]   ;;  %v1227_v8 = vld [vmem:[%s1409_s9 + $0x50] sm:$0xff]   ;;  %p1246_p2 = scmp.lt.s32.totalorder %s1244_s6, %s1238_s30 }
  0x1b   : > { %1140 = vmatprep.mubr.msk.bf16.mxu1 %vm395_vm0, %v1223_v4  ;;  %1125 = vmatmul.mubr.msk.bf16.vlgmr.msra.gmra.mrb[0].mxu0 %vm395_vm0, %v1224_v5  ;;  %v1228_v9 = vld [vmem:[%s1409_s9 + $0x18] sm:$0xff]   ;;  %v1230_v11 = vld [vmem:[%s1409_s9 + $0x20] sm:$0xff]   ;;  %v1232_v13 = vld [vmem:[%s1409_s9 + $0x28] sm:$0xff]  }
  0x1c   : > { %1141 = vmatmul.mubr.msk.bf16.vlgmr.msra.gmra.mrb[0].mxu1 %vm395_vm0, %v1225_v6  ;;  %1128 = vmatprep.mubr.msk.bf16.mxu0 %vm395_vm0, %v1226_v7  ;;  %v1229_v10 = vld [vmem:[%s1409_s9 + $0x58] sm:$0xff]   ;;  %v1231_v12 = vld [vmem:[%s1409_s9 + $0x60] sm:$0xff]   ;;  %v1233_v14 = vld [vmem:[%s1409_s9 + $0x68] sm:$0xff]   ;;  %p1247_p3 = por %p1246_p2, %p1245_p1 }
  0x1d   : > { %1144 = vmatprep.mubr.msk.bf16.mxu1 %vm395_vm0, %v1227_v8  ;;  %v1234_v15 = vld [vmem:[%s1409_s9 + $0x30] sm:$0xff]   ;;  %v1236_v17 = vld [vmem:[%s1409_s9 + $0x38] sm:$0xff]  }
  0x1e   : > { %v1235_v16 = vld [vmem:[%s1409_s9 + $0x70] sm:$0xff]   ;;  %v1237_v18 = vld [vmem:[%s1409_s9 + $0x78] sm:$0xff]   ;;  %p1248_p5 = pnand %p1247_p3, %p1241_p0 }
  0x23   : > { %1129 = vmatmul.mubr.msk.bf16.gmra.mrb[4].mxu0 %vm395_vm0, %v1228_v9 }
  0x24   : > { %1145 = vmatmul.mubr.msk.bf16.gmra.mrb[4].mxu1 %vm395_vm0, %v1229_v10  ;;  %1132 = vmatprep.mubr.msk.bf16.mxu0 %vm395_vm0, %v1230_v11 }
  0x25   : > { %1148 = vmatprep.mubr.msk.bf16.mxu1 %vm395_vm0, %v1231_v12 }
  0x2b   : > { %1133 = vmatmul.mubr.msk.bf16.gmra.mrb[8].mxu0 %vm395_vm0, %v1232_v13 }
  0x2c   : > { %1149 = vmatmul.mubr.msk.bf16.gmra.mrb[8].mxu1 %vm395_vm0, %v1233_v14  ;;  %1136 = vmatprep.mubr.msk.bf16.mxu0 %vm395_vm0, %v1234_v15 }
  0x2d   : > { %1152 = vmatprep.mubr.msk.bf16.mxu1 %vm395_vm0, %v1235_v16 }
  0x33   : > { %1137 = vmatmul.mubr.msk.bf16.gmra.mrb[12].mxu0 %vm395_vm0, %v1236_v17 }
  0x34   : > { %1153 = vmatmul.mubr.msk.bf16.gmra.mrb[12].mxu1 %vm395_vm0, %v1237_v18 }
  0xee   : > { %v1126_v19 = vpop.f32.mrb[0].mxu0 }
  0xef   : > { %v1142_v21 = vpop.f32.mrb[0].mxu1  ;;  %v478_v22 = vpop.f32.mrb[1].mxu0  ;;  %v487_v26 = vadd.f32 %v1126_v19, %v1447_v20 }
  0xf0   : > { %v542_v23 = vpop.f32.mrb[1].mxu1  ;;  %v1127_v24 = vpop.f32.mrb[2].mxu0  ;;  %v551_v27 = vadd.f32 %v1142_v21, %v1447_v20  ;;  %v479_v32 = vadd.f32 %v1447_v20, %v478_v22 }
  0xf1   : > { %v1143_v25 = vpop.f32.mrb[2].mxu1  ;;  %v490_v28 = vadd.f32 %v1127_v24, %v1447_v20  ;;  %v481_v30 = vpop.f32.mrb[3].mxu0  ;;  %v543_v33 = vadd.f32 %v1447_v20, %v542_v23 }
  0xf2   : > { %v554_v29 = vadd.f32 %v1143_v25, %v1447_v20  ;;  %v545_v31 = vpop.f32.mrb[3].mxu1  ;;  %v482_v34 = vadd.f32 %v1447_v20, %v481_v30 }
  0xf3   : > { %v546_v35 = vadd.f32 %v1447_v20, %v545_v31  ;;  %v1012_v36 = vpack.c.bf16 %v490_v28, %v487_v26 }
  0xf4   : > { %v1052_v37 = vpack.c.bf16 %v554_v29, %v551_v27  ;;  %v1007_v38 = vpack.c.bf16 %v482_v34, %v479_v32 }
  0xf5   : > { %v1047_v39 = vpack.c.bf16 %v546_v35, %v543_v33  ;;  %1084 = vst [vmem:[%s1459_s21 + $0x8] sm:$0xff] %v1012_v36  }
  0xf6   : > { %1092 = vst [vmem:[%s1459_s21 + $0x48] sm:$0xff] %v1052_v37   ;;  %1008 = vst [vmem:[%s1459_s21] sm:$0xff] %v1007_v38   ;;  %v1130_v40 = vpop.f32.mrb[4].mxu0 }
  0xf7   : > { %1091 = vst [vmem:[%s1459_s21 + $0x40] sm:$0xff] %v1047_v39   ;;  %v1146_v41 = vpop.f32.mrb[4].mxu1  ;;  %v494_v42 = vpop.f32.mrb[5].mxu0  ;;  %v503_v46 = vadd.f32 %v1130_v40, %v1447_v20 }
  0xf8   : > { %v558_v43 = vpop.f32.mrb[5].mxu1  ;;  %v1131_v44 = vpop.f32.mrb[6].mxu0  ;;  %v567_v47 = vadd.f32 %v1146_v41, %v1447_v20  ;;  %v495_v52 = vadd.f32 %v1447_v20, %v494_v42 }
  0xf9   : > { %v1147_v45 = vpop.f32.mrb[6].mxu1  ;;  %v506_v48 = vadd.f32 %v1131_v44, %v1447_v20  ;;  %v497_v50 = vpop.f32.mrb[7].mxu0  ;;  %v559_v53 = vadd.f32 %v1447_v20, %v558_v43 }
  0xfa   : > { %v570_v49 = vadd.f32 %v1147_v45, %v1447_v20  ;;  %v561_v51 = vpop.f32.mrb[7].mxu1  ;;  %v498_v54 = vadd.f32 %v1447_v20, %v497_v50 }
  0xfb   : > { %v562_v55 = vadd.f32 %v1447_v20, %v561_v51  ;;  %v1022_v56 = vpack.c.bf16 %v506_v48, %v503_v46 }
  0xfc   : > { %v1062_v57 = vpack.c.bf16 %v570_v49, %v567_v47  ;;  %v1017_v58 = vpack.c.bf16 %v498_v54, %v495_v52 }
  0xfd   : > { %v1057_v59 = vpack.c.bf16 %v562_v55, %v559_v53  ;;  %1086 = vst [vmem:[%s1459_s21 + $0x18] sm:$0xff] %v1022_v56  }
  0xfe   : > { %1094 = vst [vmem:[%s1459_s21 + $0x58] sm:$0xff] %v1062_v57   ;;  %1085 = vst [vmem:[%s1459_s21 + $0x10] sm:$0xff] %v1017_v58   ;;  %v1134_v60 = vpop.f32.mrb[8].mxu0 }
  0xff   : > { %1093 = vst [vmem:[%s1459_s21 + $0x50] sm:$0xff] %v1057_v59   ;;  %v1150_v61 = vpop.f32.mrb[8].mxu1  ;;  %v510_v62 = vpop.f32.mrb[9].mxu0  ;;  %v519_v2 = vadd.f32 %v1134_v60, %v1447_v20 }
 0x100   : > { %v574_v63 = vpop.f32.mrb[9].mxu1  ;;  %v1135_v0 = vpop.f32.mrb[10].mxu0  ;;  %v583_v3 = vadd.f32 %v1150_v61, %v1447_v20  ;;  %v511_v8 = vadd.f32 %v1447_v20, %v510_v62 }
 0x101   : > { %v1151_v1 = vpop.f32.mrb[10].mxu1  ;;  %v522_v4 = vadd.f32 %v1135_v0, %v1447_v20  ;;  %v513_v6 = vpop.f32.mrb[11].mxu0  ;;  %v575_v9 = vadd.f32 %v1447_v20, %v574_v63 }
 0x102   : > { %v586_v5 = vadd.f32 %v1151_v1, %v1447_v20  ;;  %v577_v7 = vpop.f32.mrb[11].mxu1  ;;  %v514_v10 = vadd.f32 %v1447_v20, %v513_v6 }
 0x103   : > { %v578_v11 = vadd.f32 %v1447_v20, %v577_v7  ;;  %v1032_v12 = vpack.c.bf16 %v522_v4, %v519_v2 }
 0x104   : > { %v1072_v13 = vpack.c.bf16 %v586_v5, %v583_v3  ;;  %v1027_v14 = vpack.c.bf16 %v514_v10, %v511_v8 }
 0x105   : > { %v1067_v15 = vpack.c.bf16 %v578_v11, %v575_v9  ;;  %1088 = vst [vmem:[%s1459_s21 + $0x28] sm:$0xff] %v1032_v12  }
 0x106   : > { %1096 = vst [vmem:[%s1459_s21 + $0x68] sm:$0xff] %v1072_v13   ;;  %1087 = vst [vmem:[%s1459_s21 + $0x20] sm:$0xff] %v1027_v14   ;;  %v1138_v16 = vpop.f32.mrb[12].mxu0 }
 0x107   : > { %1095 = vst [vmem:[%s1459_s21 + $0x60] sm:$0xff] %v1067_v15   ;;  %v1154_v17 = vpop.f32.mrb[12].mxu1  ;;  %v526_v18 = vpop.f32.mrb[13].mxu0  ;;  %v535_v23 = vadd.f32 %v1138_v16, %v1447_v20 }
 0x108   : > { %v590_v19 = vpop.f32.mrb[13].mxu1  ;;  %v1139_v21 = vpop.f32.mrb[14].mxu0  ;;  %v599_v24 = vadd.f32 %v1154_v17, %v1447_v20  ;;  %v527_v29 = vadd.f32 %v1447_v20, %v526_v18 }
 0x109   : > { %v1155_v22 = vpop.f32.mrb[14].mxu1  ;;  %v538_v25 = vadd.f32 %v1139_v21, %v1447_v20  ;;  %v529_v27 = vpop.f32.mrb[15].mxu0  ;;  %v591_v30 = vadd.f32 %v1447_v20, %v590_v19 }
 0x10a   : > { %v602_v26 = vadd.f32 %v1155_v22, %v1447_v20  ;;  %v593_v28 = vpop.f32.mrb[15].mxu1  ;;  %v530_v31 = vadd.f32 %v1447_v20, %v529_v27 }
 0x10b   : > { %v594_v32 = vadd.f32 %v1447_v20, %v593_v28  ;;  %v1042_v33 = vpack.c.bf16 %v538_v25, %v535_v23 }
 0x10c   : > { %v1082_v34 = vpack.c.bf16 %v602_v26, %v599_v24  ;;  %v1037_v35 = vpack.c.bf16 %v530_v31, %v527_v29 }
 0x10d   : > { %v1077_v36 = vpack.c.bf16 %v594_v32, %v591_v30  ;;  %1090 = vst [vmem:[%s1459_s21 + $0x38] sm:$0xff] %v1042_v33  }
 0x10e   : > { %1098 = vst [vmem:[%s1459_s21 + $0x78] sm:$0xff] %v1082_v34   ;;  %1089 = vst [vmem:[%s1459_s21 + $0x30] sm:$0xff] %v1037_v35  }
 0x10f   : > { %1097 = vst [vmem:[%s1459_s21 + $0x70] sm:$0xff] %v1077_v36  }
 0x110   : > { %1251 = shalt.err (!%p1248_p5)
}
 0x111   : > { %s1252_s7 = scalar_lea.hbm %s1502_s28, 2048  ;;  %s1256_s10 = scalar_lea.hbm %s1561_s3, 4096 }
 0x112   : > { %p1253_p6 = scmp.ne.s32.totalorder %s1502_s28, %s1252_s7  ;;  %p1257_p10 = scmp.lt.u32.totalorder %s1502_s28, %s1561_s3 }
 0x113   : > { %p1258_p11 = scmp.lt.u32.totalorder %s1256_s10, %s1252_s7  ;;  %p1260_p13 = scmp.lt.u32.totalorder %s1252_s7, %s1502_s28 }
 0x114   : > { %p1254_p7 = pnand %p1253_p6, %p1381_p4 }
 0x115   : > { %p1259_p12 = por %p1258_p11, %p1257_p10 }
 0x116   : > { %p1255_p9 = pneg %p1254_p7 }
 0x117   : > { %p1261_p0 = por %p1260_p13, %p1259_p12 }
 0x119   : > { %p1262_p1 = pnand %p1261_p0, %p1255_p9 }
 0x11b   : > { %1265 = shalt.err (!%p1262_p1)
}
 0x11c   : > { %s1319_s19 = smov 64   ;;  %s1320_s21 = smov 4  }
 0x11d   : > { %1162 = dma.vmem_to_hbm [thread:$0]  (%p1381_p4), %s1504_s26, 2048, %s1502_s28, %s1512_s29, %s1319_s19, %s1319_s19, %s1320_s21  }
 0x11e PF: > { %p1168_p2 = scmp.ge.s32.totalorder %s1316_s17, 2  ;;  %s795_s23 = sand.u32 1, %s1296_s12  }
 0x11f   : > { %s796_s15 = scalar_lea.sflag [#allocation3], %s795_s23 }
 0x120   : > { %p1165_p3 = pnand %p1168_p2, %p1388_p8 }
 0x122   : > { %1291 = dma.done.wait (!%p1165_p3), %s796_s15, 2048  }
 0x123   : > { %1293 = vsyncadd (!%p1165_p3), %s796_s15, 4294965248  ;;  %s16_s17 = sadd.s32 1, %s1316_s17   ;;  %s1564_s12 = smov %s1300_s13 }
 0x124   : > { %p13_p5 = scmp.ge.s32.totalorder %s16_s17, 4   ;;  %s1565_s13 = smov %s1304_s14 }
 0x125   : > { %s1566_s14 = smov %s1394_s25  ;;  %s1567_s15 = smov %s1312_s16 }
 0x126   : > { %s1568_s16 = smov %s1570_s20  ;;  %15 = sbr.rel (!%p13_p5) target bundleno = 4 (0x4), region = 73 }
 0x12d   :  { %801 = vsyncpa [#allocation3], 1 }
 0x12e   :  { %803 = vsyncpa [#allocation3 + $0x1], 1 }

</bundles_post_ra>
